<compile_context>
chip_gen: v7x
topology: tpu7x:2x2x1
jax: 0.10.0
libtpu: 0.0.40
codegen_flags: <defaults>
</compile_context>

<pallas_src>
import functools

import jax
import jax.numpy as jnp
from jax import lax
from jax.experimental import pallas as pl
from jax.experimental.pallas import tpu as pltpu


def autoencoder_kernel(x_ref,
                       w_ih1_ref, w_hh1_ref, b_ih1_ref, b_hh1_ref, wl1_ref, bl1_ref,
                       w_ih2_ref, w_hh2_ref, b_ih2_ref, b_hh2_ref, wl2_ref, bl2_ref,
                       o_ref):
    """Fused embedder (GRU+Linear) -> recovery (GRU+Linear) over one batch tile."""
    T, TB, _ = x_ref.shape
    H = w_hh1_ref.shape[0]          # GRU hidden size (static)

    # Hoist all weight loads out of the time loop (they are tiny and VMEM-resident).
    w_ih1 = w_ih1_ref[...]; w_hh1 = w_hh1_ref[...]
    b_ih1 = b_ih1_ref[...]; b_hh1 = b_hh1_ref[...]
    wl1 = wl1_ref[...];     bl1 = bl1_ref[...]
    w_ih2 = w_ih2_ref[...]; w_hh2 = w_hh2_ref[...]
    b_ih2 = b_ih2_ref[...]; b_hh2 = b_hh2_ref[...]
    wl2 = wl2_ref[...];     bl2 = bl2_ref[...]

    def gru_cell(x_t, h, w_ih, w_hh, b_ih, b_hh):
        # PyTorch GRU gate order along the packed axis: r, z, n.
        gi = jnp.dot(x_t, w_ih, preferred_element_type=jnp.float32) + b_ih   # (TB, 3H)
        gh = jnp.dot(h, w_hh, preferred_element_type=jnp.float32) + b_hh     # (TB, 3H)
        r = jax.nn.sigmoid(gi[:, 0:H] + gh[:, 0:H])
        z = jax.nn.sigmoid(gi[:, H:2 * H] + gh[:, H:2 * H])
        n = jnp.tanh(gi[:, 2 * H:3 * H] + r * gh[:, 2 * H:3 * H])
        return (1.0 - z) * n + z * h

    def step(t, carry):
        h1, h2 = carry
        x_t = x_ref[t]                                                        # (TB, F_in)
        h1 = gru_cell(x_t, h1, w_ih1, w_hh1, b_ih1, b_hh1)
        lat = jnp.dot(h1, wl1, preferred_element_type=jnp.float32) + bl1      # (TB, latent)
        h2 = gru_cell(lat, h2, w_ih2, w_hh2, b_ih2, b_hh2)
        o_ref[t] = jnp.dot(h2, wl2, preferred_element_type=jnp.float32) + bl2 # (TB, F_out)
        return (h1, h2)

    h0 = jnp.zeros((TB, H), jnp.float32)
    lax.fori_loop(0, T, step, (h0, h0))


def init_params(key, input_size=57, hidden_size=20, latent_shape=10):
    """PyTorch-style uniform init, already laid out for the kernel.

    GRU weights are stored transposed as (F_in, 3H) / (H, 3H) with gate order
    (r, z, n); biases as (1, 3H); Linear weights as (F_in, F_out), bias (1, F_out).
    All layout prep is hoisted here (one-time) per the perf feedback.
    """
    H = hidden_size

    def uniform(k, shape, bound):
        return jax.random.uniform(k, shape, minval=-bound, maxval=bound,
                                  dtype=jnp.float32)

    keys = jax.random.split(key, 12)
    gru_b = 1.0 / (H ** 0.5)          # PyTorch GRU: U(+-1/sqrt(hidden))
    lin_b = 1.0 / (H ** 0.5)          # Linear fan_in = hidden_size for both heads

    embedder = dict(
        w_ih=uniform(keys[0], (input_size, 3 * H), gru_b),
        w_hh=uniform(keys[1], (H, 3 * H), gru_b),
        b_ih=uniform(keys[2], (1, 3 * H), gru_b),
        b_hh=uniform(keys[3], (1, 3 * H), gru_b),
        w_lin=uniform(keys[4], (H, latent_shape), lin_b),
        b_lin=uniform(keys[5], (1, latent_shape), lin_b),
    )
    recovery = dict(
        w_ih=uniform(keys[6], (latent_shape, 3 * H), gru_b),
        w_hh=uniform(keys[7], (H, 3 * H), gru_b),
        b_ih=uniform(keys[8], (1, 3 * H), gru_b),
        b_hh=uniform(keys[9], (1, 3 * H), gru_b),
        w_lin=uniform(keys[10], (H, input_size), lin_b),
        b_lin=uniform(keys[11], (1, input_size), lin_b),
    )
    return embedder, recovery


def _pick_batch_tile(b8):
    """Batch tile: big (fewer grid steps), but >=2 steps when possible for v7x's 2 TCs."""
    if b8 > 512:
        return 256
    if b8 >= 16 and b8 % 16 == 0:
        return b8 // 2          # 2 parallel grid steps -> both TensorCores on v7x
    return b8


def autoencoder_forward(x, params):
    """x: (B, T, input_size) float32 -> (B, T, input_size) float32."""
    emb, rec = params
    B, T, F_in = x.shape
    F_out = rec["w_lin"].shape[1]

    B8 = ((B + 7) // 8) * 8
    TB = _pick_batch_tile(B8)
    B_pad = ((B8 + TB - 1) // TB) * TB
    grid = (B_pad // TB,)

    # Time-major so the kernel indexes the leading axis dynamically.
    xt = jnp.transpose(x, (1, 0, 2))                     # (T, B, F_in)
    if B_pad != B:
        xt = jnp.pad(xt, ((0, 0), (0, B_pad - B), (0, 0)))

    weights = (emb["w_ih"], emb["w_hh"], emb["b_ih"], emb["b_hh"],
               emb["w_lin"], emb["b_lin"],
               rec["w_ih"], rec["w_hh"], rec["b_ih"], rec["b_hh"],
               rec["w_lin"], rec["b_lin"])

    full2d = lambda i: (0, 0)
    w_specs = [pl.BlockSpec(w.shape, full2d) for w in weights]

    out = pl.pallas_call(
        autoencoder_kernel,
        out_shape=jax.ShapeDtypeStruct((T, B_pad, F_out), jnp.float32),
        grid_spec=pltpu.PrefetchScalarGridSpec(
            num_scalar_prefetch=0,
            grid=grid,
            in_specs=[pl.BlockSpec((T, TB, F_in), lambda i: (0, i, 0))] + w_specs,
            out_specs=pl.BlockSpec((T, TB, F_out), lambda i: (0, i, 0)),
        ),
        compiler_params=pltpu.CompilerParams(
            dimension_semantics=("parallel",)),
    )(xt, *weights)

    return jnp.transpose(out[:, :B, :], (1, 0, 2))       # back to (B, T, F_out)


# ----------------------------- pure-JAX reference -----------------------------

def _gru_ref(x, w_ih, w_hh, b_ih, b_hh):
    B = x.shape[0]
    H = w_hh.shape[0]

    def cell(h, x_t):
        gi = x_t @ w_ih + b_ih
        gh = h @ w_hh + b_hh
        r = jax.nn.sigmoid(gi[:, :H] + gh[:, :H])
        z = jax.nn.sigmoid(gi[:, H:2 * H] + gh[:, H:2 * H])
        n = jnp.tanh(gi[:, 2 * H:] + r * gh[:, 2 * H:])
        h_new = (1.0 - z) * n + z * h
        return h_new, h_new

    h0 = jnp.zeros((B, H), jnp.float32)
    _, hs = lax.scan(cell, h0, jnp.transpose(x, (1, 0, 2)))
    return jnp.transpose(hs, (1, 0, 2))


def autoencoder_forward_ref(x, params):
    emb, rec = params
    h1 = _gru_ref(x, emb["w_ih"], emb["w_hh"], emb["b_ih"], emb["b_hh"])
    lat = h1 @ emb["w_lin"] + emb["b_lin"]
    h2 = _gru_ref(lat, rec["w_ih"], rec["w_hh"], rec["b_ih"], rec["b_hh"])
    return h2 @ rec["w_lin"] + rec["b_lin"]


if __name__ == "__main__":
    key = jax.random.PRNGKey(0)
    k_param, k_x = jax.random.split(key)

    INPUT_SIZE, HIDDEN, LATENT = 57, 20, 10
    B, T = 4, 8

    params = init_params(k_param, input_size=INPUT_SIZE,
                         hidden_size=HIDDEN, latent_shape=LATENT)
    x = jax.random.normal(k_x, (B, T, INPUT_SIZE), dtype=jnp.float32)

    out = jax.block_until_ready(autoencoder_forward(x, params))
    ref = autoencoder_forward_ref(x, params)

    assert out.shape == (B, T, INPUT_SIZE)
    assert jnp.allclose(out, ref, atol=2e-3, rtol=2e-3), float(
        jnp.max(jnp.abs(out - ref)))

    print("KERNEL_OK")
</pallas_src>

<mosaic_0001>
module attributes {stable_mosaic.version = 11 : i64} {
  func.func @autoencoder_kernel(%arg0: i32, %arg1: memref<8x8x57xf32, #tpu.memory_space<vmem>>, %arg2: memref<57x60xf32, #tpu.memory_space<vmem>>, %arg3: memref<20x60xf32, #tpu.memory_space<vmem>>, %arg4: memref<1x60xf32, #tpu.memory_space<vmem>>, %arg5: memref<1x60xf32, #tpu.memory_space<vmem>>, %arg6: memref<20x10xf32, #tpu.memory_space<vmem>>, %arg7: memref<1x10xf32, #tpu.memory_space<vmem>>, %arg8: memref<10x60xf32, #tpu.memory_space<vmem>>, %arg9: memref<20x60xf32, #tpu.memory_space<vmem>>, %arg10: memref<1x60xf32, #tpu.memory_space<vmem>>, %arg11: memref<1x60xf32, #tpu.memory_space<vmem>>, %arg12: memref<20x57xf32, #tpu.memory_space<vmem>>, %arg13: memref<1x57xf32, #tpu.memory_space<vmem>>, %arg14: memref<8x8x57xf32, #tpu.memory_space<vmem>>) attributes {dimension_semantics = [#tpu.dimension_semantics<parallel>], iteration_bounds = array<i64: 1>, scalar_prefetch = 0 : i64, scratch_operands = 0 : i64, tpu.core_type = #tpu.core_type<tc>, window_params = [{transform_indices = @transform_0, window_bounds = array<i64: 8, 8, 57>}, {pipeline_mode = #tpu.pipeline_mode<synchronous>, transform_indices = @transform_1, window_bounds = array<i64: 57, 60>}, {pipeline_mode = #tpu.pipeline_mode<synchronous>, transform_indices = @transform_2, window_bounds = array<i64: 20, 60>}, {pipeline_mode = #tpu.pipeline_mode<synchronous>, transform_indices = @transform_3, window_bounds = array<i64: 1, 60>}, {pipeline_mode = #tpu.pipeline_mode<synchronous>, transform_indices = @transform_4, window_bounds = array<i64: 1, 60>}, {pipeline_mode = #tpu.pipeline_mode<synchronous>, transform_indices = @transform_5, window_bounds = array<i64: 20, 10>}, {pipeline_mode = #tpu.pipeline_mode<synchronous>, transform_indices = @transform_6, window_bounds = array<i64: 1, 10>}, {pipeline_mode = #tpu.pipeline_mode<synchronous>, transform_indices = @transform_7, window_bounds = array<i64: 10, 60>}, {pipeline_mode = #tpu.pipeline_mode<synchronous>, transform_indices = @transform_8, window_bounds = array<i64: 20, 60>}, {pipeline_mode = #tpu.pipeline_mode<synchronous>, transform_indices = @transform_9, window_bounds = array<i64: 1, 60>}, {pipeline_mode = #tpu.pipeline_mode<synchronous>, transform_indices = @transform_10, window_bounds = array<i64: 1, 60>}, {pipeline_mode = #tpu.pipeline_mode<synchronous>, transform_indices = @transform_11, window_bounds = array<i64: 20, 57>}, {pipeline_mode = #tpu.pipeline_mode<synchronous>, transform_indices = @transform_12, window_bounds = array<i64: 1, 57>}, {transform_indices = @transform_13, window_bounds = array<i64: 8, 8, 57>}]} {
    %c0 = arith.constant 0 : index
    %c0_0 = arith.constant 0 : index
    %0 = vector.load %arg2[%c0, %c0_0] : memref<57x60xf32, #tpu.memory_space<vmem>>, vector<57x60xf32>
    %c0_1 = arith.constant 0 : index
    %c0_2 = arith.constant 0 : index
    %1 = vector.load %arg3[%c0_1, %c0_2] : memref<20x60xf32, #tpu.memory_space<vmem>>, vector<20x60xf32>
    %c0_3 = arith.constant 0 : index
    %c0_4 = arith.constant 0 : index
    %2 = vector.load %arg4[%c0_3, %c0_4] : memref<1x60xf32, #tpu.memory_space<vmem>>, vector<1x60xf32>
    %c0_5 = arith.constant 0 : index
    %c0_6 = arith.constant 0 : index
    %3 = vector.load %arg5[%c0_5, %c0_6] : memref<1x60xf32, #tpu.memory_space<vmem>>, vector<1x60xf32>
    %c0_7 = arith.constant 0 : index
    %c0_8 = arith.constant 0 : index
    %4 = vector.load %arg6[%c0_7, %c0_8] : memref<20x10xf32, #tpu.memory_space<vmem>>, vector<20x10xf32>
    %c0_9 = arith.constant 0 : index
    %c0_10 = arith.constant 0 : index
    %5 = vector.load %arg7[%c0_9, %c0_10] : memref<1x10xf32, #tpu.memory_space<vmem>>, vector<1x10xf32>
    %c0_11 = arith.constant 0 : index
    %c0_12 = arith.constant 0 : index
    %6 = vector.load %arg8[%c0_11, %c0_12] : memref<10x60xf32, #tpu.memory_space<vmem>>, vector<10x60xf32>
    %c0_13 = arith.constant 0 : index
    %c0_14 = arith.constant 0 : index
    %7 = vector.load %arg9[%c0_13, %c0_14] : memref<20x60xf32, #tpu.memory_space<vmem>>, vector<20x60xf32>
    %c0_15 = arith.constant 0 : index
    %c0_16 = arith.constant 0 : index
    %8 = vector.load %arg10[%c0_15, %c0_16] : memref<1x60xf32, #tpu.memory_space<vmem>>, vector<1x60xf32>
    %c0_17 = arith.constant 0 : index
    %c0_18 = arith.constant 0 : index
    %9 = vector.load %arg11[%c0_17, %c0_18] : memref<1x60xf32, #tpu.memory_space<vmem>>, vector<1x60xf32>
    %c0_19 = arith.constant 0 : index
    %c0_20 = arith.constant 0 : index
    %10 = vector.load %arg12[%c0_19, %c0_20] : memref<20x57xf32, #tpu.memory_space<vmem>>, vector<20x57xf32>
    %c0_21 = arith.constant 0 : index
    %c0_22 = arith.constant 0 : index
    %11 = vector.load %arg13[%c0_21, %c0_22] : memref<1x57xf32, #tpu.memory_space<vmem>>, vector<1x57xf32>
    %cst = arith.constant 0.000000e+00 : f32
    %12 = vector.broadcast %cst : f32 to vector<8x20xf32>
    %c0_i32 = arith.constant 0 : i32
    %c8_i32 = arith.constant 8 : i32
    %13 = arith.addi %c0_i32, %c8_i32 : i32
    %c1_i32 = arith.constant 1 : i32
    %14:2 = scf.for %arg15 = %c0_i32 to %13 step %c1_i32 iter_args(%arg16 = %12, %arg17 = %12) -> (vector<8x20xf32>, vector<8x20xf32>)  : i32 {
      %15 = arith.index_cast %arg15 : i32 to index
      %c0_24 = arith.constant 0 : index
      %c0_25 = arith.constant 0 : index
      %16 = vector.load %arg1[%15, %c0_24, %c0_25] : memref<8x8x57xf32, #tpu.memory_space<vmem>>, vector<1x8x57xf32>
      %17 = vector.shape_cast %16 : vector<1x8x57xf32> to vector<8x57xf32>
      %cst_26 = arith.constant dense<0.000000e+00> : vector<8x60xf32>
      %18 = tpu.matmul %17, %0, %cst_26 {dimension_numbers = #tpu.dot_dimension_numbers<[1], [0], [0], [1], [0, 0, 1, 1], [], []>} : vector<8x57xf32>, vector<57x60xf32>, vector<8x60xf32> -> vector<8x60xf32>
      %19 = vector.broadcast %2 : vector<1x60xf32> to vector<8x60xf32>
      %20 = arith.addf %18, %19 : vector<8x60xf32>
      %cst_27 = arith.constant dense<0.000000e+00> : vector<8x60xf32>
      %21 = tpu.matmul %arg16, %1, %cst_27 {dimension_numbers = #tpu.dot_dimension_numbers<[1], [0], [0], [1], [0, 0, 1, 1], [], []>} : vector<8x20xf32>, vector<20x60xf32>, vector<8x60xf32> -> vector<8x60xf32>
      %22 = vector.broadcast %3 : vector<1x60xf32> to vector<8x60xf32>
      %23 = arith.addf %21, %22 : vector<8x60xf32>
      %24 = vector.extract_strided_slice %20 {offsets = [0, 0], sizes = [8, 20], strides = [1, 1]} : vector<8x60xf32> to vector<8x20xf32>
      %25 = vector.extract_strided_slice %23 {offsets = [0, 0], sizes = [8, 20], strides = [1, 1]} : vector<8x60xf32> to vector<8x20xf32>
      %26 = arith.addf %24, %25 : vector<8x20xf32>
      %27 = arith.negf %26 : vector<8x20xf32>
      %28 = math.exp %27 : vector<8x20xf32>
      %cst_28 = arith.constant 1.000000e+00 : f32
      %29 = vector.broadcast %cst_28 : f32 to vector<8x20xf32>
      %30 = arith.addf %29, %28 : vector<8x20xf32>
      %31 = arith.divf %29, %30 : vector<8x20xf32>
      %32 = vector.extract_strided_slice %20 {offsets = [0, 20], sizes = [8, 20], strides = [1, 1]} : vector<8x60xf32> to vector<8x20xf32>
      %33 = vector.extract_strided_slice %23 {offsets = [0, 20], sizes = [8, 20], strides = [1, 1]} : vector<8x60xf32> to vector<8x20xf32>
      %34 = arith.addf %32, %33 : vector<8x20xf32>
      %35 = arith.negf %34 : vector<8x20xf32>
      %36 = math.exp %35 : vector<8x20xf32>
      %cst_29 = arith.constant 1.000000e+00 : f32
      %37 = vector.broadcast %cst_29 : f32 to vector<8x20xf32>
      %38 = arith.addf %37, %36 : vector<8x20xf32>
      %39 = arith.divf %37, %38 : vector<8x20xf32>
      %40 = vector.extract_strided_slice %20 {offsets = [0, 40], sizes = [8, 20], strides = [1, 1]} : vector<8x60xf32> to vector<8x20xf32>
      %41 = vector.extract_strided_slice %23 {offsets = [0, 40], sizes = [8, 20], strides = [1, 1]} : vector<8x60xf32> to vector<8x20xf32>
      %42 = arith.mulf %31, %41 : vector<8x20xf32>
      %43 = arith.addf %40, %42 : vector<8x20xf32>
      %44 = math.tanh %43 : vector<8x20xf32>
      %cst_30 = arith.constant 1.000000e+00 : f32
      %45 = vector.broadcast %cst_30 : f32 to vector<8x20xf32>
      %46 = arith.subf %45, %39 : vector<8x20xf32>
      %47 = arith.mulf %46, %44 : vector<8x20xf32>
      %48 = arith.mulf %39, %arg16 : vector<8x20xf32>
      %49 = arith.addf %47, %48 : vector<8x20xf32>
      %cst_31 = arith.constant dense<0.000000e+00> : vector<8x10xf32>
      %50 = tpu.matmul %49, %4, %cst_31 {dimension_numbers = #tpu.dot_dimension_numbers<[1], [0], [0], [1], [0, 0, 1, 1], [], []>} : vector<8x20xf32>, vector<20x10xf32>, vector<8x10xf32> -> vector<8x10xf32>
      %51 = vector.broadcast %5 : vector<1x10xf32> to vector<8x10xf32>
      %52 = arith.addf %50, %51 : vector<8x10xf32>
      %cst_32 = arith.constant dense<0.000000e+00> : vector<8x60xf32>
      %53 = tpu.matmul %52, %6, %cst_32 {dimension_numbers = #tpu.dot_dimension_numbers<[1], [0], [0], [1], [0, 0, 1, 1], [], []>} : vector<8x10xf32>, vector<10x60xf32>, vector<8x60xf32> -> vector<8x60xf32>
      %54 = vector.broadcast %8 : vector<1x60xf32> to vector<8x60xf32>
      %55 = arith.addf %53, %54 : vector<8x60xf32>
      %cst_33 = arith.constant dense<0.000000e+00> : vector<8x60xf32>
      %56 = tpu.matmul %arg17, %7, %cst_33 {dimension_numbers = #tpu.dot_dimension_numbers<[1], [0], [0], [1], [0, 0, 1, 1], [], []>} : vector<8x20xf32>, vector<20x60xf32>, vector<8x60xf32> -> vector<8x60xf32>
      %57 = vector.broadcast %9 : vector<1x60xf32> to vector<8x60xf32>
      %58 = arith.addf %56, %57 : vector<8x60xf32>
      %59 = vector.extract_strided_slice %55 {offsets = [0, 0], sizes = [8, 20], strides = [1, 1]} : vector<8x60xf32> to vector<8x20xf32>
      %60 = vector.extract_strided_slice %58 {offsets = [0, 0], sizes = [8, 20], strides = [1, 1]} : vector<8x60xf32> to vector<8x20xf32>
      %61 = arith.addf %59, %60 : vector<8x20xf32>
      %62 = arith.negf %61 : vector<8x20xf32>
      %63 = math.exp %62 : vector<8x20xf32>
      %cst_34 = arith.constant 1.000000e+00 : f32
      %64 = vector.broadcast %cst_34 : f32 to vector<8x20xf32>
      %65 = arith.addf %64, %63 : vector<8x20xf32>
      %66 = arith.divf %64, %65 : vector<8x20xf32>
      %67 = vector.extract_strided_slice %55 {offsets = [0, 20], sizes = [8, 20], strides = [1, 1]} : vector<8x60xf32> to vector<8x20xf32>
      %68 = vector.extract_strided_slice %58 {offsets = [0, 20], sizes = [8, 20], strides = [1, 1]} : vector<8x60xf32> to vector<8x20xf32>
      %69 = arith.addf %67, %68 : vector<8x20xf32>
      %70 = arith.negf %69 : vector<8x20xf32>
      %71 = math.exp %70 : vector<8x20xf32>
      %cst_35 = arith.constant 1.000000e+00 : f32
      %72 = vector.broadcast %cst_35 : f32 to vector<8x20xf32>
      %73 = arith.addf %72, %71 : vector<8x20xf32>
      %74 = arith.divf %72, %73 : vector<8x20xf32>
      %75 = vector.extract_strided_slice %55 {offsets = [0, 40], sizes = [8, 20], strides = [1, 1]} : vector<8x60xf32> to vector<8x20xf32>
      %76 = vector.extract_strided_slice %58 {offsets = [0, 40], sizes = [8, 20], strides = [1, 1]} : vector<8x60xf32> to vector<8x20xf32>
      %77 = arith.mulf %66, %76 : vector<8x20xf32>
      %78 = arith.addf %75, %77 : vector<8x20xf32>
      %79 = math.tanh %78 : vector<8x20xf32>
      %cst_36 = arith.constant 1.000000e+00 : f32
      %80 = vector.broadcast %cst_36 : f32 to vector<8x20xf32>
      %81 = arith.subf %80, %74 : vector<8x20xf32>
      %82 = arith.mulf %81, %79 : vector<8x20xf32>
      %83 = arith.mulf %74, %arg17 : vector<8x20xf32>
      %84 = arith.addf %82, %83 : vector<8x20xf32>
      %cst_37 = arith.constant dense<0.000000e+00> : vector<8x57xf32>
      %85 = tpu.matmul %84, %10, %cst_37 {dimension_numbers = #tpu.dot_dimension_numbers<[1], [0], [0], [1], [0, 0, 1, 1], [], []>} : vector<8x20xf32>, vector<20x57xf32>, vector<8x57xf32> -> vector<8x57xf32>
      %86 = vector.broadcast %11 : vector<1x57xf32> to vector<8x57xf32>
      %87 = arith.addf %85, %86 : vector<8x57xf32>
      %88 = arith.index_cast %arg15 : i32 to index
      %c0_38 = arith.constant 0 : index
      %c0_39 = arith.constant 0 : index
      %89 = vector.load %arg14[%88, %c0_38, %c0_39] : memref<8x8x57xf32, #tpu.memory_space<vmem>>, vector<1x8x57xf32>
      %90 = vector.shape_cast %89 : vector<1x8x57xf32> to vector<8x57xf32>
      %91 = vector.shape_cast %87 : vector<8x57xf32> to vector<1x8x57xf32>
      tpu.vector_store %arg14[%88, %c0_38, %c0_39], %91 {strides = array<i32>} : memref<8x8x57xf32, #tpu.memory_space<vmem>>, vector<1x8x57xf32>,
      scf.yield %49, %84 : vector<8x20xf32>, vector<8x20xf32>
    }
    %c8_i32_23 = arith.constant 8 : i32
    return
  }
  func.func @transform_0(%arg0: i32) -> (i32, i32, i32) {
    %c0_i32 = arith.constant 0 : i32
    %c0_i32_0 = arith.constant 0 : i32
    %c0_i32_1 = arith.constant 0 : i32
    return %c0_i32, %arg0, %c0_i32_0 : i32, i32, i32
  }
  func.func @transform_1(%arg0: i32) -> (i32, i32) {
    %c0_i32 = arith.constant 0 : i32
    %c0_i32_0 = arith.constant 0 : i32
    %c0_i32_1 = arith.constant 0 : i32
    return %c0_i32, %c0_i32_0 : i32, i32
  }
  func.func @transform_2(%arg0: i32) -> (i32, i32) {
    %c0_i32 = arith.constant 0 : i32
    %c0_i32_0 = arith.constant 0 : i32
    %c0_i32_1 = arith.constant 0 : i32
    return %c0_i32, %c0_i32_0 : i32, i32
  }
  func.func @transform_3(%arg0: i32) -> (i32, i32) {
    %c0_i32 = arith.constant 0 : i32
    %c0_i32_0 = arith.constant 0 : i32
    %c0_i32_1 = arith.constant 0 : i32
    return %c0_i32, %c0_i32_0 : i32, i32
  }
  func.func @transform_4(%arg0: i32) -> (i32, i32) {
    %c0_i32 = arith.constant 0 : i32
    %c0_i32_0 = arith.constant 0 : i32
    %c0_i32_1 = arith.constant 0 : i32
    return %c0_i32, %c0_i32_0 : i32, i32
  }
  func.func @transform_5(%arg0: i32) -> (i32, i32) {
    %c0_i32 = arith.constant 0 : i32
    %c0_i32_0 = arith.constant 0 : i32
    %c0_i32_1 = arith.constant 0 : i32
    return %c0_i32, %c0_i32_0 : i32, i32
  }
  func.func @transform_6(%arg0: i32) -> (i32, i32) {
    %c0_i32 = arith.constant 0 : i32
    %c0_i32_0 = arith.constant 0 : i32
    %c0_i32_1 = arith.constant 0 : i32
    return %c0_i32, %c0_i32_0 : i32, i32
  }
  func.func @transform_7(%arg0: i32) -> (i32, i32) {
    %c0_i32 = arith.constant 0 : i32
    %c0_i32_0 = arith.constant 0 : i32
    %c0_i32_1 = arith.constant 0 : i32
    return %c0_i32, %c0_i32_0 : i32, i32
  }
  func.func @transform_8(%arg0: i32) -> (i32, i32) {
    %c0_i32 = arith.constant 0 : i32
    %c0_i32_0 = arith.constant 0 : i32
    %c0_i32_1 = arith.constant 0 : i32
    return %c0_i32, %c0_i32_0 : i32, i32
  }
  func.func @transform_9(%arg0: i32) -> (i32, i32) {
    %c0_i32 = arith.constant 0 : i32
    %c0_i32_0 = arith.constant 0 : i32
    %c0_i32_1 = arith.constant 0 : i32
    return %c0_i32, %c0_i32_0 : i32, i32
  }
  func.func @transform_10(%arg0: i32) -> (i32, i32) {
    %c0_i32 = arith.constant 0 : i32
    %c0_i32_0 = arith.constant 0 : i32
    %c0_i32_1 = arith.constant 0 : i32
    return %c0_i32, %c0_i32_0 : i32, i32
  }
  func.func @transform_11(%arg0: i32) -> (i32, i32) {
    %c0_i32 = arith.constant 0 : i32
    %c0_i32_0 = arith.constant 0 : i32
    %c0_i32_1 = arith.constant 0 : i32
    return %c0_i32, %c0_i32_0 : i32, i32
  }
  func.func @transform_12(%arg0: i32) -> (i32, i32) {
    %c0_i32 = arith.constant 0 : i32
    %c0_i32_0 = arith.constant 0 : i32
    %c0_i32_1 = arith.constant 0 : i32
    return %c0_i32, %c0_i32_0 : i32, i32
  }
  func.func @transform_13(%arg0: i32) -> (i32, i32, i32) {
    %c0_i32 = arith.constant 0 : i32
    %c0_i32_0 = arith.constant 0 : i32
    %c0_i32_1 = arith.constant 0 : i32
    return %c0_i32, %arg0, %c0_i32_0 : i32, i32, i32
  }
}

</mosaic_0001>

<bundles_post_ra>
// kernel: tpu_custom_call.1
= control target key start
LH: loop header
LB: loop body
LE: loop exit
PB: predicated region body
PF: predicated region fallthrough
CT: control target
= control target key end

     0   :  { %18 = vsyncpa [#allocation3], 0  ;;  %s1483_s0 = inlined_call_operand.hbm [shape: f32[8,8,57], index: 0, kind: input, shape index: {}]   ;;  %s1484_s1 = inlined_call_operand.hbm [shape: f32[57,60], index: 1, kind: input, shape index: {}]   ;;  %s1485_s2 = inlined_call_operand.vmem [shape: f32[20,60], index: 2, kind: input, shape index: {}]   ;;  %s1486_s3 = inlined_call_operand.vmem [shape: f32[1,60], index: 3, kind: input, shape index: {}]   ;;  %s1487_s4 = inlined_call_operand.vmem [shape: f32[1,60], index: 4, kind: input, shape index: {}]   ;;  %s1488_s5 = inlined_call_operand.vmem [shape: f32[20,10], index: 5, kind: input, shape index: {}]   ;;  %s1489_s6 = inlined_call_operand.hbm [shape: f32[1,10], index: 6, kind: input, shape index: {}]   ;;  %s1490_s7 = inlined_call_operand.hbm [shape: f32[10,60], index: 7, kind: input, shape index: {}]   ;;  %s1491_s8 = inlined_call_operand.vmem [shape: f32[20,60], index: 8, kind: input, shape index: {}]   ;;  %s1492_s9 = inlined_call_operand.hbm [shape: f32[1,60], index: 9, kind: input, shape index: {}]   ;;  %s1493_s10 = inlined_call_operand.vmem [shape: f32[1,60], index: 10, kind: input, shape index: {}]   ;;  %s1494_s11 = inlined_call_operand.vmem [shape: f32[20,57], index: 11, kind: input, shape index: {}]   ;;  %s1495_s12 = inlined_call_operand.vmem [shape: f32[1,57], index: 12, kind: input, shape index: {}]   ;;  %s1496_s13 = inlined_call_operand.hbm [shape: f32[8,8,57], index: 13, kind: output, shape index: {}]  }
   0x1   :  { %19 = vsyncpa [#allocation6], 0 }
   0x2   :  { %20 = vsyncpa [#allocation9], 0 }
   0x3   :  { %21 = vsyncpa [#allocation4], 0  ;;  %s1097_s25 = smov [#allocation5]   ;;  %s1098_s27 = smov [#allocation8]  }
   0x4   :  { %s39_s26 = sshll.u32 %s1097_s25, 4  ;;  %s69_s28 = sshll.u32 %s1098_s27, 4  ;;  %s40_s26 = int_to_ptr.vmem [resolvable:$true] %s39_s26  ;;  %s1182_s28 = int_to_ptr.vmem [resolvable:$true] %s69_s28 }
   0x5   :  { %s933_s14 = scalar_lea.hbm %s1484_s1, 1024 }
   0x6   :  { %p934_p0 = scmp.ne.s32.totalorder %s1484_s1, %s933_s14  ;;  %p937_p1 = scmp.lt.u32.totalorder %s933_s14, %s1484_s1 }
   0x8   :  { %p939_p2 = pnand %p937_p1, %p934_p0 }
   0xa   :  { %942 = shalt.err (!%p939_p2)
}
   0xb   :  { %s943_s19 = scalar_lea.vmem %s40_s26, 1024  ;;  %p948_p4 = scmp.lt.s32.totalorder %s40_s26, %s40_s26 }
   0xc   :  { %p944_p3 = scmp.ne.s32.totalorder %s40_s26, %s943_s19  ;;  %p949_p5 = scmp.lt.s32.totalorder %s943_s19, %s943_s19 }
   0xe   :  { %p950_p6 = por %p949_p5, %p948_p4 }
  0x10   :  { %p951_p7 = pnand %p950_p6, %p944_p3 }
  0x12   :  { %954 = shalt.err (!%p951_p7)
}
  0x13   :  { %s1099_s20 = smov 128   ;;  %s1100_s21 = smov 8  }
  0x14   :  { %45 = dma.hbm_to_vmem [thread:$0]  %s1484_s1, 1024, %s40_s26, [#allocation6], %s1099_s20, %s1099_s20, %s1100_s21  }
  0x15   :  { %s955_s27 = scalar_lea.hbm %s1490_s7, 256 }
  0x16   :  { %p956_p8 = scmp.ne.s32.totalorder %s1490_s7, %s955_s27  ;;  %p959_p9 = scmp.lt.u32.totalorder %s955_s27, %s1490_s7 }
  0x18   :  { %p961_p10 = pnand %p959_p9, %p956_p8 }
  0x1a   :  { %964 = shalt.err (!%p961_p10)
}
  0x1b   :  { %s965_s16 = scalar_lea.vmem %s1182_s28, 256  ;;  %p970_p12 = scmp.lt.s32.totalorder %s1182_s28, %s1182_s28 }
  0x1c   :  { %p966_p11 = scmp.ne.s32.totalorder %s1182_s28, %s965_s16  ;;  %p971_p13 = scmp.lt.s32.totalorder %s965_s16, %s965_s16 }
  0x1e   :  { %p972_p0 = por %p971_p13, %p970_p12 }
  0x20   :  { %p973_p1 = pnand %p972_p0, %p966_p11 }
  0x22   :  { %976 = shalt.err (!%p973_p1)
}
  0x23   :  { %75 = dma.hbm_to_vmem [thread:$0]  %s1490_s7, 256, %s1182_s28, [#allocation9], %s1099_s20, %s1099_s20, %s1100_s21  }
  0x24   :  { %s1101_s17 = smov [#allocation2]   ;;  %s1102_s19 = smov [#allocation7]  }
  0x25   :  { %s27_s18 = sshll.u32 %s1101_s17, 4  ;;  %s60_s22 = sshll.u32 %s1102_s19, 4  ;;  %s28_s18 = int_to_ptr.vmem [resolvable:$true] %s27_s18  ;;  %s61_s22 = int_to_ptr.vmem [resolvable:$true] %s60_s22 }
  0x26   :  { %s977_s25 = scalar_lea.hbm %s1483_s0, 1024 }
  0x27   :  { %p978_p2 = scmp.ne.s32.totalorder %s1483_s0, %s977_s25  ;;  %p981_p3 = scmp.lt.u32.totalorder %s977_s25, %s1483_s0 }
  0x29   :  { %p983_p4 = pnand %p981_p3, %p978_p2 }
  0x2b   :  { %986 = shalt.err (!%p983_p4)
}
  0x2c   :  { %s987_s7 = scalar_lea.vmem %s28_s18, 1024  ;;  %p992_p6 = scmp.lt.s32.totalorder %s28_s18, %s28_s18 }
  0x2d   :  { %p988_p5 = scmp.ne.s32.totalorder %s28_s18, %s987_s7  ;;  %p993_p7 = scmp.lt.s32.totalorder %s987_s7, %s987_s7 }
  0x2f   :  { %p994_p8 = por %p993_p7, %p992_p6 }
  0x31   :  { %p995_p9 = pnand %p994_p8, %p988_p5 }
  0x33   :  { %998 = shalt.err (!%p995_p9)
}
  0x34   :  { %33 = dma.hbm_to_vmem [thread:$0]  %s1483_s0, 1024, %s28_s18, [#allocation3], %s1099_s20, %s1099_s20, %s1100_s21  }
  0x35   :  { %s999_s26 = scalar_lea.hbm %s1489_s6, 16 }
  0x36   :  { %p1000_p10 = scmp.ne.s32.totalorder %s1489_s6, %s999_s26  ;;  %p1003_p11 = scmp.lt.u32.totalorder %s999_s26, %s1489_s6 }
  0x38   :  { %p1005_p12 = pnand %p1003_p11, %p1000_p10 }
  0x3a   :  { %1008 = shalt.err (!%p1005_p12)
}
  0x3b   :  { %s1009_s25 = scalar_lea.vmem %s61_s22, 16  ;;  %s1013_s27 = scalar_lea.vmem %s61_s22, 32 }
  0x3c   :  { %p1010_p13 = scmp.ne.s32.totalorder %s61_s22, %s1009_s25  ;;  %p1014_p0 = scmp.lt.s32.totalorder %s61_s22, %s61_s22 }
  0x3d   :  { %p1015_p1 = scmp.lt.s32.totalorder %s1013_s27, %s1009_s25 }
  0x3f   :  { %p1016_p2 = por %p1015_p1, %p1014_p0 }
  0x41   :  { %p1017_p3 = pnand %p1016_p2, %p1010_p13 }
  0x43   :  { %1020 = shalt.err (!%p1017_p3)
}
  0x44   :  { %63 = dma.hbm_to_vmem [thread:$0]  %s1489_s6, 16, %s61_s22, [#allocation6]  }
  0x45   :  { %s1103_s29 = smov [#allocation10]   ;;  %s1021_s28 = scalar_lea.hbm %s1492_s9, 16 }
  0x46   :  { %s84_s30 = sshll.u32 %s1103_s29, 4  ;;  %p1022_p4 = scmp.ne.s32.totalorder %s1492_s9, %s1021_s28  ;;  %s85_s30 = int_to_ptr.vmem [resolvable:$true] %s84_s30 }
  0x47   :  { %p1025_p5 = scmp.lt.u32.totalorder %s1021_s28, %s1492_s9 }
  0x49   :  { %p1027_p6 = pnand %p1025_p5, %p1022_p4 }
  0x4b   :  { %1030 = shalt.err (!%p1027_p6)
}
  0x4c   :  { %s1031_s17 = scalar_lea.vmem %s85_s30, 16  ;;  %s1035_s6 = scalar_lea.vmem %s85_s30, 32 }
  0x4d   :  { %p1032_p7 = scmp.ne.s32.totalorder %s85_s30, %s1031_s17  ;;  %p1036_p8 = scmp.lt.s32.totalorder %s85_s30, %s85_s30 }
  0x4e   :  { %p1037_p9 = scmp.lt.s32.totalorder %s1035_s6, %s1031_s17 }
  0x50   :  { %p1038_p10 = por %p1037_p9, %p1036_p8 }
  0x52   :  { %p1039_p11 = pnand %p1038_p10, %p1032_p7 }
  0x54   :  { %1042 = shalt.err (!%p1039_p11)
}
  0x55   :  { %87 = dma.hbm_to_vmem [thread:$0]  %s1492_s9, 16, %s85_s30, [#allocation9]  }
  0x56   :  { %1077 = dma.done.wait [#allocation3], 1024  }
  0x57   :  { %1078 = vsyncadd [#allocation3], 4294966272 }
  0x58   :  { %1079 = dma.done.wait [#allocation6], 1040  }
  0x59   :  { %1080 = vsyncadd [#allocation6], 4294966256 }
  0x5a   :  { %1081 = dma.done.wait [#allocation9], 272  }
  0x5b   :  { %1082 = vsyncadd [#allocation9], 4294967024  ;;  %v1258_v0 = vld [vmem:[#allocation5] sm:$0xff]  ;;  %v1260_v1 = vld [vmem:[#allocation5 + $0x8] sm:$0xff]  ;;  %v1362_v28 = vmov 0.0   ;;  %v1364_v29 = vmov 0.0  }
  0x5c   :  { %v1262_v2 = vld [vmem:[#allocation5 + $0x10] sm:$0xff]  ;;  %v1264_v3 = vld [vmem:[#allocation5 + $0x18] sm:$0xff]  ;;  %v1266_v4 = vld [vmem:[#allocation5 + $0x20] sm:$0xff] }
  0x5d   :  { %v1268_v5 = vld [vmem:[#allocation5 + $0x28] sm:$0xff]  ;;  %v1270_v6 = vld [vmem:[#allocation5 + $0x30] sm:$0xff]  ;;  %v1272_v7 = vld [vmem:[#allocation5 + $0x38] sm:$0x1] }
  0x5e   :  { %v1277_v8 = vld [vmem:[%s1485_s2] sm:$0xff]  ;;  %v1282_v9 = vld [vmem:[%s1485_s2 + $0x8] sm:$0xff]  ;;  %v1287_v10 = vld [vmem:[%s1485_s2 + $0x10] sm:$0xf] }
  0x5f   :  { %v1292_v11 = vld [vmem:[%s1486_s3] ss:$0 sm:$0xff]  ;;  %v1307_v14 = vld [vmem:[%s1488_s5 + $0x8] sm:$0xff]  ;;  %v1312_v15 = vld [vmem:[%s1488_s5 + $0x10] sm:$0xf] }
  0x60   :  { %v1297_v12 = vld [vmem:[%s1487_s4] ss:$0 sm:$0xff]  ;;  %v1316_v17 = vld [vmem:[#allocation8] sm:$0xff]  ;;  %v1318_v18 = vld [vmem:[#allocation8 + $0x8] sm:$0x3] }
  0x61   :  { %v1302_v13 = vld [vmem:[%s1488_s5] sm:$0xff]  ;;  %v1328_v20 = vld [vmem:[%s1491_s8 + $0x8] sm:$0xff]  ;;  %v1333_v21 = vld [vmem:[%s1491_s8 + $0x10] sm:$0xf] }
  0x62   :  { %v1314_v16 = vld [vmem:[#allocation7] ss:$0 sm:$0xff]  ;;  %v1335_v22 = vld [vmem:[#allocation10] ss:$0 sm:$0xff]  ;;  %v1350_v25 = vld [vmem:[%s1494_s11 + $0x8] sm:$0xff] }
  0x63   :  { %v1323_v19 = vld [vmem:[%s1491_s8] sm:$0xff]  ;;  %v1355_v26 = vld [vmem:[%s1494_s11 + $0x10] sm:$0xf] }
  0x64   :  { %v1340_v23 = vld [vmem:[%s1493_s10] ss:$0 sm:$0xff]  ;;  %s1366_s10 = smov 0  }
  0x65   :  { %v1345_v24 = vld [vmem:[%s1494_s11] sm:$0xff] }
  0x66   :  { %v1360_v27 = vld [vmem:[%s1495_s12] ss:$0 sm:$0xff] }
  0x67 LB: > { %v854_v30 = vpack.c.bf16 %v1260_v1, %v1258_v0  ;;  %v1104_v31 = vmov 0.0|0.0   ;;  %v867_v32 = vpack.c.bf16 %v1282_v9, %v1277_v8  ;;  %s1105_s11 = smov 108   ;;  %v857_v33 = vpack.c.bf16 %v1264_v3, %v1262_v2  ;;  %s742_s12 = sshll.u32 %s1095_s10, 3  ;;  %s1095_s10 = sphi %s1366_s10, %s142_s10   ;;  %v1091_v29 = vphi %v1364_v29, %v343_v29   ;;  %v1087_v28 = vphi %v1362_v28, %v621_v28  }
  0x68   : > { %853 = vmatprep.subr.bf16.mxu0 %v1104_v31  ;;  %866 = vmatprep.subr.bf16.mxu1 %v1104_v31  ;;  %v1106_v34 = vmov 0.0   ;;  %vm1107_vm0 = vmmov 0   ;;  %vm244_vm1 = vcmask 1043456   ;;  %v860_v35 = vpack.c.bf16 %v1268_v5, %v1266_v4  ;;  %s146_s29 = scalar_lea.vmem [#allocation2], %s742_s12  ;;  %s1109_s30 = smov 88  }
  0x69   : > { %239 = vrot.lane.b32.xlu0 %v1091_v29, %s1105_s11  ;;  %855 = vmatpush3.bf16.msra.mxu0 %v854_v30  ;;  %vm158_vm2 = vcmask 1040384   ;;  %v863_v36 = vpack.c.bf16 %v1272_v7, %v1270_v6  ;;  %vm1108_vm3 = vmmov 1   ;;  %v147_v37 = vld [vmem:[%s146_s29] sm:$0xff]  ;;  %vm154_vm5 = vcmask 465920   ;;  %s1110_s14 = smov 40   ;;  %s706_s7 = scalar_lea.vmem [#allocation11], %s742_s12 }
  0x6a   : > { %856 = vmatprep.subr.bf16.mxu0 %v1104_v31  ;;  %868 = vmatpush3.bf16.msra.mxu1 %v867_v32  ;;  %vm864_vm4 = vmpackc.low %vm158_vm2, %vm1108_vm3  ;;  %vm241_vm6 = vcmask 162816   ;;  %v870_v54 = vpack.c.bf16 %v1307_v14, %v1302_v13  ;;  %v877_v56 = vpack.c.bf16 %v1328_v20, %v1323_v19  ;;  %vm438_vm7 = vcmask 1041408   ;;  %s142_s10 = sadd.s32 1, %s1095_s10  }
  0x6b   : > { %814 = vmatprep.subr.mxu1 %v1106_v34  ;;  %807 = vmatprep.mubr.msk.f32.mxu0 %vm1107_vm0, %v1106_v34  ;;  %v873_v62 = vpack.c.bf16 %v1318_v18, %v1316_v17  ;;  %vm874_vm8 = vmpackc.low %vm438_vm7, %vm1108_vm3  ;;  %vm434_vm9 = vcmask 80896   ;;  %p139_p12 = scmp.ge.s32.totalorder %s142_s10, 8  }
  0x6c   : > { %816 = vmatprep.mubr.msk.f32.mxu1 %vm1107_vm0, %v1106_v34  ;;  %s1111_s28 = smov (%p139_p12), [#allocation11]  }
  0x6d   : > { %858 = vmatpush3.bf16.msra.mxu0 %v857_v33  ;;  %s713_s15 = sshll.u32 (%p139_p12), %s1111_s28, 4  ;;  %s714_s15 = int_to_ptr.vmem [resolvable:$true] %s713_s15 }
  0x6e   : > { %859 = vmatprep.subr.bf16.mxu0 %v1104_v31  ;;  %815 = vmatpush3.msk.msra.mxu1 %vm244_vm1, %v1287_v10  ;;  %s1043_s16 = scalar_lea.vmem (%p139_p12), %s714_s15, 1024  ;;  %p1048_p0 = scmp.lt.s32.totalorder (%p139_p12), %s714_s15, %s714_s15 }
  0x6f   : > { %869 = vmatprep.subr.bf16.mxu1 %v1104_v31  ;;  %p1044_p13 = scmp.ne.s32.totalorder (%p139_p12), %s714_s15, %s1043_s16  ;;  %p1049_p1 = scmp.lt.s32.totalorder (%p139_p12), %s1043_s16, %s1043_s16 }
  0x71   : > { %861 = vmatpush3.bf16.msra.mxu0 %v860_v35  ;;  %p1050_p2 = por (%p139_p12), %p1049_p1, %p1048_p0 }
  0x72   : > { %862 = vmatprep.subr.bf16.mxu0 %v1104_v31 }
  0x73   :  { %p1051_p3 = pnand (%p139_p12), %p1050_p2, %p1044_p13 }
  0x75   : > { %865 = vmatpush3.bf16.msk.msra.mxu0 %vm864_vm4, %v863_v36 }
  0x76   : > { %876 = vmatprep.subr.bf16.mxu0 %v1104_v31 }
  0x78   : > { %808 = vmatmul.mubr.msk.f32.vlgmr.msra.gmra.mrb[0].mxu0 %vm154_vm5, %v147_v37 }
  0x79   : > { %841 = vmatprep.mubr.msk.f32.mxu0 %vm1107_vm0, %v1106_v34  ;;  %878 = vmatpush3.bf16.msra.mxu0 %v877_v56 }
  0x7a   : > { %839 = vmatprep.subr.mxu0 %v1106_v34 }
  0x7d   : > { %840 = vmatpush3.msk.msra.mxu0 %vm244_vm1, %v1333_v21 }
  0xdb   : > { %v240_v38 = vpop.permute.xlu0 %239 }
  0xdc   : > { %817 = vmatmul.mubr.msk.f32.vlgmr.msra.gmra.mrb[0].mxu1 %vm241_vm6, %v240_v38 }
  0xdd   : > { %825 = vmatprep.mubr.msk.f32.mxu1 %vm1107_vm0, %v1106_v34  ;;  %871 = vmatpush3.bf16.msra.mxu1 %v870_v54 }
  0xde   : > { %823 = vmatprep.subr.mxu1 %v1106_v34 }
  0xe1   : > { %824 = vmatpush3.msk.msra.mxu1 %vm244_vm1, %v1312_v15 }
  0xe2   : > { %872 = vmatprep.subr.bf16.mxu1 %v1104_v31 }
 0x14b   : > { %v228_v39 = vpop.f32.mrb[0].mxu0 }
 0x14c   : > { %v809_v40 = vpop.f32.mrb[1].mxu0  ;;  %v229_v44 = vadd.f32 %v1292_v11, %v228_v39 }
 0x1af   : > { %v314_v41 = vpop.f32.mrb[0].mxu1 }
 0x1b0   : > { %v315_v42 = vadd.f32 %v1297_v12, %v314_v41  ;;  %v818_v43 = vpop.f32.mrb[1].mxu1 }
 0x1b2   : > { %326 = vrot.lane.b32.xlu0 %v315_v42, %s1109_s30  ;;  %v318_v45 = vadd.f32 %v315_v42, %v229_v44 }
 0x1b4   : > { %v749_v46 = vmul.f32 -1.442695, %v318_v45 }
 0x1b6   : > { %921 = vpow2.f32 %v749_v46 }
 0x1c0   : > { %v922_v47 = vpop.eup %921 }
 0x1c1   : > { %v322_v48 = vadd.f32 1.0, %v922_v47 }
 0x1c3   : > { %923 = vrcp.f32 %v322_v48 }
 0x1cd   : > { %v924_v49 = vpop.eup %923 }
 0x1ce   : > { %v336_v57 = vsub.f32 1.0, %v924_v49  ;;  %v342_v59 = vmul.f32 %v1091_v29, %v924_v49 }
 0x224   : > { %v327_v50 = vpop.permute.xlu0 %326 }
 0x225   : > { %v329_v51 = vmul.f32 %v924_v49, %v327_v50  ;;  %v880_v49 = vpack.c.bf16 %v1350_v25, %v1345_v24 }
 0x227   : > { %331 = vrot.lane.b32.xlu1 %v329_v51, %s1110_s14 }
 0x299   : > { %v332_v52 = vpop.permute.xlu1 %331 }
 0x29a   : > { %v334_v53 = vadd.f32 %v332_v52, %v229_v44 }
 0x29c   : > { %925 = vtanh.f32 %v334_v53 }
 0x2a6   : > { %v926_v55 = vpop.eup %925 }
 0x2a7   : > { %338 = vrot.lane.b32.xlu1 %v926_v55, %s1105_s11 }
 0x2ab   : > { %519 = vrot.lane.b32.xlu1 %v1087_v28, %s1105_s11 }
 0x319   : > { %v339_v58 = vpop.permute.xlu1 %338 }
 0x31a   : > { %v341_v60 = vmul.f32 %v339_v58, %v336_v57 }
 0x31c   : > { %v343_v29 = vadd.f32 %v342_v59, %v341_v60  }
 0x31d   : > { %v520_v61 = vpop.permute.xlu1 %519 }
 0x31e   : > { %351 = vrot.lane.b32.xlu0 %v343_v29, %s1105_s11  ;;  %842 = vmatmul.mubr.msk.f32.vlgmr.msra.gmra.mrb[2].mxu0 %vm241_vm6, %v520_v61 }
 0x390   : > { %v352_v63 = vpop.permute.xlu0 %351 }
 0x391   : > { %826 = vmatmul.mubr.msk.f32.vlgmr.msra.gmra.mrb[2].mxu1 %vm241_vm6, %v352_v63 }
 0x392   : > { %875 = vmatpush3.bf16.msk.msra.mxu1 %vm874_vm8, %v873_v62  ;;  %832 = vmatprep.mubr.msk.f32.mxu1 %vm1107_vm0, %v1106_v34 }
 0x393   : > { %879 = vmatprep.subr.bf16.mxu1 %v1104_v31 }
 0x3f1   : > { %v592_v30 = vpop.f32.mrb[2].mxu0 }
 0x3f2   : > { %v593_v32 = vadd.f32 %v1340_v23, %v592_v30  ;;  %v843_v33 = vpop.f32.mrb[3].mxu0 }
 0x3f4   : > { %604 = vrot.lane.b32.xlu0 %v593_v32, %s1109_s30 }
 0x464   : > { %v424_v35 = vpop.f32.mrb[2].mxu1 }
 0x465   : > { %v425_v36 = vadd.f32 %v1314_v16, %v424_v35  ;;  %v827_v37 = vpop.f32.mrb[3].mxu1 }
 0x466   : > { %v605_v44 = vpop.permute.xlu0 %604 }
 0x467   : > { %833 = vmatmul.mubr.msk.f32.vlgmr.msra.gmra.mrb[4].mxu1 %vm434_vm9, %v425_v36 }
 0x468   : > { %850 = vmatprep.mubr.msk.f32.mxu1 %vm1107_vm0, %v1106_v34  ;;  %881 = vmatpush3.bf16.msra.mxu1 %v880_v49 }
 0x469   : > { %848 = vmatprep.subr.mxu1 %v1106_v34 }
 0x46c   : > { %849 = vmatpush3.msk.msra.mxu1 %vm244_vm1, %v1355_v26 }
 0x53a   : > { %v508_v38 = vpop.f32.mrb[4].mxu1 }
 0x53b   : > { %v509_v39 = vadd.f32 %v1335_v22, %v508_v38  ;;  %v834_v40 = vpop.f32.mrb[5].mxu1 }
 0x53d   : > { %v596_v31 = vadd.f32 %v593_v32, %v509_v39 }
 0x53f   : > { %v759_v41 = vmul.f32 -1.442695, %v596_v31 }
 0x541   : > { %927 = vpow2.f32 %v759_v41 }
 0x54b   : > { %v928_v42 = vpop.eup %927 }
 0x54c   : > { %v600_v43 = vadd.f32 1.0, %v928_v42 }
 0x54e   : > { %929 = vrcp.f32 %v600_v43 }
 0x558   : > { %v930_v45 = vpop.eup %929 }
 0x559   : > { %v607_v46 = vmul.f32 %v930_v45, %v605_v44  ;;  %v614_v51 = vsub.f32 1.0, %v930_v45  ;;  %v620_v53 = vmul.f32 %v1087_v28, %v930_v45 }
 0x55b   : > { %609 = vrot.lane.b32.xlu1 %v607_v46, %s1110_s14 }
 0x5cd   : > { %v610_v47 = vpop.permute.xlu1 %609 }
 0x5ce   : > { %v612_v48 = vadd.f32 %v610_v47, %v509_v39 }
 0x5d0   : > { %931 = vtanh.f32 %v612_v48 }
 0x5da   : > { %v932_v50 = vpop.eup %931 }
 0x5db   : > { %616 = vrot.lane.b32.xlu0 %v932_v50, %s1105_s11 }
 0x64d   : > { %v617_v52 = vpop.permute.xlu0 %616 }
 0x64e   : > { %v619_v54 = vmul.f32 %v617_v52, %v614_v51 }
 0x650   : > { %v621_v28 = vadd.f32 %v620_v53, %v619_v54  }
 0x652   : > { %629 = vrot.lane.b32.xlu1 %v621_v28, %s1105_s11 }
 0x6c4   : > { %v630_v55 = vpop.permute.xlu1 %629 }
 0x6c5   : > { %851 = vmatmul.mubr.msk.f32.vlgmr.msra.gmra.mrb[6].mxu1 %vm241_vm6, %v630_v55 }
 0x795   :  { %141 = sbr.rel (!%p139_p12) target bundleno = 103 (0x67), region = 101 }
 0x798   : > { %v702_v56 = vpop.f32.mrb[6].mxu1 }
 0x799   : > { %v703_v34 = vadd.f32 %v1360_v27, %v702_v56  ;;  %v852_v57 = vpop.f32.mrb[7].mxu1 }
 0x79b   : > { %707 = vst.msk [vmem:[%s706_s7] sm:$0xff] %vm154_vm5, %v703_v34 }
 0x79c   :  { %1054 = shalt.err (!%p1051_p3)
}
 0x79d   :  { %s1055_s3 = scalar_lea.hbm %s1496_s13, 1024 }
 0x79e   :  { %p1056_p4 = scmp.ne.s32.totalorder %s1496_s13, %s1055_s3  ;;  %p1059_p5 = scmp.lt.u32.totalorder %s1055_s3, %s1496_s13 }
 0x7a0   :  { %p1061_p6 = pnand %p1059_p5, %p1056_p4 }
 0x7a2   :  { %1064 = shalt.err (!%p1061_p6)
}
 0x7a3   :  { %719 = dma.vmem_to_hbm [thread:$0]  %s714_s15, 1024, %s1496_s13, [#allocation4], %s1099_s20, %s1099_s20, %s1100_s21  }
 0x7a4   :  { %1083 = dma.done.wait [#allocation4], 1024  }
 0x7a5   :  { %1084 = vsyncadd [#allocation4], 4294966272 }
 0x7a6   :  { %723 = vsyncpa [#allocation3], 1 }
 0x7a7   :  { %724 = vsyncpa [#allocation6], 1 }
 0x7a8   :  { %725 = vsyncpa [#allocation9], 1 }
 0x7a9   :  { %726 = vsyncpa [#allocation4], 1 }

</bundles_post_ra>
